<compile_context>
chip_gen: v6e
topology: v6e:2x2x1
jax: 0.10.0
libtpu: 0.0.40
codegen_flags: <defaults>
</compile_context>

<pallas_src>
import functools

import jax
import jax.numpy as jnp
from jax.experimental import pallas as pl
from jax.experimental.pallas import tpu as pltpu


# ---------------------------------------------------------------------------
# Fused kernel: prompt assembly + all (depth) linear projections, grid=()
# ---------------------------------------------------------------------------
def _fused_maple_kernel(affix_ref, x_ref, w_ref, b_ref, prompts_ref, proj_ref,
                        *, n_cls, n_ctx, depth):
    # affix_ref:   (n_cls, 1 + n_suf, D)   row 0 = token_prefix, rows 1.. = token_suffix
    # x_ref:       (depth, n_ctx, D)       row 0 = ctx, rows 1.. = compound_prompts_text
    # w_ref:       (depth, D, V)           pre-transposed Linear weights (y = x @ W + b)
    # b_ref:       (depth, 1, V)           float32 (pre-cast at init)
    # prompts_ref: (n_cls, seq, D)         seq = 1 + n_ctx + n_suf
    # proj_ref:    (depth, n_ctx, V)
    D = prompts_ref.shape[-1]

    # ---- prompt assembly: three direct sub-stores (no concat / XLU rotates) ----
    prompts_ref[:, 0:1, :] = affix_ref[:, 0:1, :]                       # prefix (SOS)
    ctx = x_ref[0].astype(prompts_ref.dtype)                            # (n_ctx, D)
    prompts_ref[:, 1:1 + n_ctx, :] = jnp.broadcast_to(                  # ctx, bcast over cls
        ctx[None, :, :], (n_cls, n_ctx, D))
    prompts_ref[:, 1 + n_ctx:, :] = affix_ref[:, 1:, :]                 # suffix (cls + EOS)

    # ---- projections: statically unrolled per-depth dots, f32 accumulation ----
    # depth is tiny (>=1, typically <=12), so the unroll is free and gives the
    # scheduler clean independent MXU pushes straight into each output tile.
    for d in range(depth):
        acc = jnp.dot(x_ref[d], w_ref[d], preferred_element_type=jnp.float32)
        proj_ref[d] = (acc + b_ref[d]).astype(proj_ref.dtype)


def maple_forward_fused(affix, x_stack, w_stack, b_stack, *, n_ctx):
    """Single pallas_call (grid=()) for the whole MaPLe forward.

    affix:   (n_cls, 1 + n_suf, D)  = concat([token_prefix, token_suffix], axis=1)
    x_stack: (depth, n_ctx, D)       rows = [ctx, compound_prompts_text...]
    w_stack: (depth, D, V)           rows = [proj_w, compound_proj_w...]
    b_stack: (depth, 1, V)           float32

    Returns: prompts (n_cls, seq, D) [dtype of affix], proj_out (depth, n_ctx, V)
    """
    n_cls, n_affix, ctx_dim = affix.shape
    depth = x_stack.shape[0]
    vis_dim = w_stack.shape[-1]
    seq = n_affix + n_ctx

    # Advisory cost estimate (latency-bound microkernel; lets XLA overlap it).
    flops = 2 * depth * n_ctx * ctx_dim * vis_dim
    in_bytes = sum(int(a.size) * a.dtype.itemsize
                   for a in (affix, x_stack, w_stack, b_stack))
    out_bytes = (n_cls * seq * ctx_dim * affix.dtype.itemsize
                 + depth * n_ctx * vis_dim * x_stack.dtype.itemsize)

    kernel = functools.partial(_fused_maple_kernel,
                               n_cls=n_cls, n_ctx=n_ctx, depth=depth)
    vmem = pl.BlockSpec(memory_space=pltpu.MemorySpace.VMEM)  # whole array, VMEM-resident
    return pl.pallas_call(
        kernel,
        out_shape=(
            jax.ShapeDtypeStruct((n_cls, seq, ctx_dim), affix.dtype),
            jax.ShapeDtypeStruct((depth, n_ctx, vis_dim), x_stack.dtype),
        ),
        in_specs=[vmem, vmem, vmem, vmem],
        out_specs=(vmem, vmem),
        cost_estimate=pl.CostEstimate(
            flops=flops, transcendentals=0, bytes_accessed=in_bytes + out_bytes),
    )(affix, x_stack, w_stack, b_stack)


# ---------------------------------------------------------------------------
# MultiModalPromptLearner (synthetic, deterministic parameters)
# ---------------------------------------------------------------------------
class MultiModalPromptLearnerPallas:
    def __init__(self, key, *, n_cls, n_ctx, ctx_dim, vis_dim, seq_len, prompt_depth,
                 dtype=jnp.float32):
        # dtype: storage dtype for embeddings / weights. f32 here for exact reference
        # checks; on v6e/v7x bf16 halves HBM->VMEM bytes with no compute penalty
        # (accumulation stays f32 inside the kernel).
        assert prompt_depth >= 1
        self.n_cls = n_cls
        self.n_ctx = n_ctx
        self.prompt_depth = prompt_depth
        self.dtype = dtype
        n_suf = seq_len - 1 - n_ctx
        assert n_suf >= 1

        keys = jax.random.split(key, 8 + 2 * (prompt_depth - 1))
        k = iter(keys)

        # ctx vectors ~ N(0, 0.02)   (the "else" branch of __init__)
        self.ctx = (0.02 * jax.random.normal(next(k), (n_ctx, ctx_dim))).astype(dtype)

        # proj: nn.Linear(ctx_dim, vis_dim) -> stored as (ctx_dim, vis_dim) + bias (vis_dim,)
        self.proj_w = (0.02 * jax.random.normal(next(k), (ctx_dim, vis_dim))).astype(dtype)
        self.proj_b = (0.02 * jax.random.normal(next(k), (vis_dim,))).astype(dtype)

        # compound text prompts (depth - 1) ~ N(0, 0.02); shape (n_ctx, ctx_dim)
        self.compound_prompts_text = [
            (0.02 * jax.random.normal(next(k), (n_ctx, ctx_dim))).astype(dtype)
            for _ in range(prompt_depth - 1)
        ]
        # compound projections: Linear(ctx_dim, vis_dim) each (deep copies -> independent)
        self.compound_proj_w = [
            (0.02 * jax.random.normal(next(k), (ctx_dim, vis_dim))).astype(dtype)
            for _ in range(prompt_depth - 1)
        ]
        self.compound_proj_b = [
            (0.02 * jax.random.normal(next(k), (vis_dim,))).astype(dtype)
            for _ in range(prompt_depth - 1)
        ]

        # token_prefix / token_suffix buffers (stand-ins for CLIP token embeddings)
        # TODO(synk): real CLIP tokenizer/token_embedding not reproduced; buffers are synthetic.
        self.token_prefix = (0.02 * jax.random.normal(next(k), (n_cls, 1, ctx_dim))).astype(dtype)
        self.token_suffix = (0.02 * jax.random.normal(next(k), (n_cls, n_suf, ctx_dim))).astype(dtype)

        # Pre-packed operands for the single fused kernel (forward-only module):
        #  - affix = [prefix ; suffix] as ONE operand (fewer kernel operands / DMAs)
        #  - x_stack row 0 doubles as ctx (no separate ctx operand)
        #  - b_stack pre-cast to f32 so the kernel adds bias in the MXU accumulator dtype
        self._affix = jnp.concatenate([self.token_prefix, self.token_suffix], axis=1)
        self._x_stack = jnp.stack([self.ctx] + self.compound_prompts_text)           # (depth, n_ctx, D)
        self._w_stack = jnp.stack([self.proj_w] + self.compound_proj_w)              # (depth, D, V)
        self._b_stack = (jnp.stack([self.proj_b] + self.compound_proj_b)
                         .astype(jnp.float32)[:, None, :])                           # (depth, 1, V) f32

    def __call__(self):
        # ONE pallas_call: prompts = cat([prefix, ctx.expand, suffix], 1),
        #                  proj_out[d] = x[d] @ W[d] + b[d] for all depth layers.
        prompts, proj_out = maple_forward_fused(
            self._affix, self._x_stack, self._w_stack, self._b_stack, n_ctx=self.n_ctx)

        shared_ctx = proj_out[0]
        visual_deep_prompts = [proj_out[i] for i in range(1, self.prompt_depth)]
        return prompts, shared_ctx, self.compound_prompts_text, visual_deep_prompts


# ---------------------------------------------------------------------------
# Reference (pure jnp) for a quick sanity check
# ---------------------------------------------------------------------------
def _reference_forward(m):
    ctx_e = jnp.broadcast_to(m.ctx[None], (m.n_cls,) + m.ctx.shape)
    prompts = jnp.concatenate([m.token_prefix, ctx_e, m.token_suffix], axis=1)
    shared = m.ctx @ m.proj_w + m.proj_b
    deep = [p @ w + b for p, w, b in
            zip(m.compound_prompts_text, m.compound_proj_w, m.compound_proj_b)]
    return prompts, shared, m.compound_prompts_text, deep


if __name__ == "__main__":
    # Small shapes consistent with the module's semantics.
    N_CLS, N_CTX, CTX_DIM, VIS_DIM, SEQ, DEPTH = 4, 4, 128, 256, 16, 3

    key = jax.random.PRNGKey(0)
    learner = MultiModalPromptLearnerPallas(
        key, n_cls=N_CLS, n_ctx=N_CTX, ctx_dim=CTX_DIM, vis_dim=VIS_DIM,
        seq_len=SEQ, prompt_depth=DEPTH, dtype=jnp.float32)

    prompts, shared_ctx, text_prompts, visual_prompts = learner()
    jax.block_until_ready((prompts, shared_ctx, visual_prompts))

    # sanity check vs pure-JAX reference
    r_prompts, r_shared, _, r_visual = _reference_forward(learner)
    assert prompts.shape == (N_CLS, SEQ, CTX_DIM)
    assert shared_ctx.shape == (N_CTX, VIS_DIM)
    assert len(visual_prompts) == DEPTH - 1
    assert jnp.allclose(prompts, r_prompts, atol=1e-5)
    assert jnp.allclose(shared_ctx, r_shared, atol=1e-4)
    for a, b in zip(visual_prompts, r_visual):
        assert a.shape == (N_CTX, VIS_DIM)
        assert jnp.allclose(a, b, atol=1e-4)

    print("KERNEL_OK")
</pallas_src>

<mosaic_0001>
module attributes {stable_mosaic.version = 11 : i64} {
  func.func @_fused_maple_kernel(%arg0: memref<4x12x128xf32, #tpu.memory_space<vmem>>, %arg1: memref<3x4x128xf32, #tpu.memory_space<vmem>>, %arg2: memref<3x128x256xf32, #tpu.memory_space<vmem>>, %arg3: memref<3x1x256xf32, #tpu.memory_space<vmem>>, %arg4: memref<4x16x128xf32, #tpu.memory_space<vmem>>, %arg5: memref<3x4x256xf32, #tpu.memory_space<vmem>>) attributes {dimension_semantics = [], scalar_prefetch = 0 : i64, scratch_operands = 0 : i64, tpu.core_type = #tpu.core_type<tc>} {
    %c0 = arith.constant 0 : index
    %c0_0 = arith.constant 0 : index
    %c0_1 = arith.constant 0 : index
    %0 = vector.load %arg0[%c0, %c0_0, %c0_1] : memref<4x12x128xf32, #tpu.memory_space<vmem>>, vector<4x1x128xf32>
    %c0_2 = arith.constant 0 : index
    %c0_3 = arith.constant 0 : index
    %c0_4 = arith.constant 0 : index
    %1 = vector.load %arg4[%c0_2, %c0_3, %c0_4] : memref<4x16x128xf32, #tpu.memory_space<vmem>>, vector<4x1x128xf32>
    tpu.vector_store %arg4[%c0_2, %c0_3, %c0_4], %0 {strides = array<i32>} : memref<4x16x128xf32, #tpu.memory_space<vmem>>, vector<4x1x128xf32>,
    %c0_5 = arith.constant 0 : index
    %c0_6 = arith.constant 0 : index
    %c0_7 = arith.constant 0 : index
    %2 = vector.load %arg1[%c0_5, %c0_6, %c0_7] : memref<3x4x128xf32, #tpu.memory_space<vmem>>, vector<1x4x128xf32>
    %3 = vector.shape_cast %2 : vector<1x4x128xf32> to vector<4x128xf32>
    %4 = vector.shape_cast %3 : vector<4x128xf32> to vector<1x4x128xf32>
    %5 = vector.shape_cast %4 : vector<1x4x128xf32> to vector<1x4x128xf32>
    %6 = vector.broadcast %5 : vector<1x4x128xf32> to vector<4x4x128xf32>
    %c0_8 = arith.constant 0 : index
    %c1 = arith.constant 1 : index
    %c0_9 = arith.constant 0 : index
    %7 = vector.load %arg4[%c0_8, %c1, %c0_9] : memref<4x16x128xf32, #tpu.memory_space<vmem>>, vector<4x4x128xf32>
    tpu.vector_store %arg4[%c0_8, %c1, %c0_9], %6 {strides = array<i32>} : memref<4x16x128xf32, #tpu.memory_space<vmem>>, vector<4x4x128xf32>,
    %c0_10 = arith.constant 0 : index
    %c1_11 = arith.constant 1 : index
    %c0_12 = arith.constant 0 : index
    %8 = vector.load %arg0[%c0_10, %c1_11, %c0_12] : memref<4x12x128xf32, #tpu.memory_space<vmem>>, vector<4x11x128xf32>
    %c0_13 = arith.constant 0 : index
    %c5 = arith.constant 5 : index
    %c0_14 = arith.constant 0 : index
    %9 = vector.load %arg4[%c0_13, %c5, %c0_14] : memref<4x16x128xf32, #tpu.memory_space<vmem>>, vector<4x11x128xf32>
    tpu.vector_store %arg4[%c0_13, %c5, %c0_14], %8 {strides = array<i32>} : memref<4x16x128xf32, #tpu.memory_space<vmem>>, vector<4x11x128xf32>,
    %c0_15 = arith.constant 0 : index
    %c0_16 = arith.constant 0 : index
    %c0_17 = arith.constant 0 : index
    %10 = vector.load %arg1[%c0_15, %c0_16, %c0_17] : memref<3x4x128xf32, #tpu.memory_space<vmem>>, vector<1x4x128xf32>
    %11 = vector.shape_cast %10 : vector<1x4x128xf32> to vector<4x128xf32>
    %c0_18 = arith.constant 0 : index
    %c0_19 = arith.constant 0 : index
    %c0_20 = arith.constant 0 : index
    %12 = vector.load %arg2[%c0_18, %c0_19, %c0_20] : memref<3x128x256xf32, #tpu.memory_space<vmem>>, vector<1x128x256xf32>
    %13 = vector.shape_cast %12 : vector<1x128x256xf32> to vector<128x256xf32>
    %cst = arith.constant dense<0.000000e+00> : vector<4x256xf32>
    %14 = tpu.matmul %11, %13, %cst {dimension_numbers = #tpu.dot_dimension_numbers<[1], [0], [0], [1], [0, 0, 1, 1], [], []>} : vector<4x128xf32>, vector<128x256xf32>, vector<4x256xf32> -> vector<4x256xf32>
    %c0_21 = arith.constant 0 : index
    %c0_22 = arith.constant 0 : index
    %c0_23 = arith.constant 0 : index
    %15 = vector.load %arg3[%c0_21, %c0_22, %c0_23] : memref<3x1x256xf32, #tpu.memory_space<vmem>>, vector<1x1x256xf32>
    %16 = vector.shape_cast %15 : vector<1x1x256xf32> to vector<1x256xf32>
    %17 = vector.broadcast %16 : vector<1x256xf32> to vector<4x256xf32>
    %18 = arith.addf %14, %17 : vector<4x256xf32>
    %c0_24 = arith.constant 0 : index
    %c0_25 = arith.constant 0 : index
    %c0_26 = arith.constant 0 : index
    %19 = vector.load %arg5[%c0_24, %c0_25, %c0_26] : memref<3x4x256xf32, #tpu.memory_space<vmem>>, vector<1x4x256xf32>
    %20 = vector.shape_cast %19 : vector<1x4x256xf32> to vector<4x256xf32>
    %21 = vector.shape_cast %18 : vector<4x256xf32> to vector<1x4x256xf32>
    tpu.vector_store %arg5[%c0_24, %c0_25, %c0_26], %21 {strides = array<i32>} : memref<3x4x256xf32, #tpu.memory_space<vmem>>, vector<1x4x256xf32>,
    %c1_27 = arith.constant 1 : index
    %c0_28 = arith.constant 0 : index
    %c0_29 = arith.constant 0 : index
    %22 = vector.load %arg1[%c1_27, %c0_28, %c0_29] : memref<3x4x128xf32, #tpu.memory_space<vmem>>, vector<1x4x128xf32>
    %23 = vector.shape_cast %22 : vector<1x4x128xf32> to vector<4x128xf32>
    %c1_30 = arith.constant 1 : index
    %c0_31 = arith.constant 0 : index
    %c0_32 = arith.constant 0 : index
    %24 = vector.load %arg2[%c1_30, %c0_31, %c0_32] : memref<3x128x256xf32, #tpu.memory_space<vmem>>, vector<1x128x256xf32>
    %25 = vector.shape_cast %24 : vector<1x128x256xf32> to vector<128x256xf32>
    %cst_33 = arith.constant dense<0.000000e+00> : vector<4x256xf32>
    %26 = tpu.matmul %23, %25, %cst_33 {dimension_numbers = #tpu.dot_dimension_numbers<[1], [0], [0], [1], [0, 0, 1, 1], [], []>} : vector<4x128xf32>, vector<128x256xf32>, vector<4x256xf32> -> vector<4x256xf32>
    %c1_34 = arith.constant 1 : index
    %c0_35 = arith.constant 0 : index
    %c0_36 = arith.constant 0 : index
    %27 = vector.load %arg3[%c1_34, %c0_35, %c0_36] : memref<3x1x256xf32, #tpu.memory_space<vmem>>, vector<1x1x256xf32>
    %28 = vector.shape_cast %27 : vector<1x1x256xf32> to vector<1x256xf32>
    %29 = vector.broadcast %28 : vector<1x256xf32> to vector<4x256xf32>
    %30 = arith.addf %26, %29 : vector<4x256xf32>
    %c1_37 = arith.constant 1 : index
    %c0_38 = arith.constant 0 : index
    %c0_39 = arith.constant 0 : index
    %31 = vector.load %arg5[%c1_37, %c0_38, %c0_39] : memref<3x4x256xf32, #tpu.memory_space<vmem>>, vector<1x4x256xf32>
    %32 = vector.shape_cast %31 : vector<1x4x256xf32> to vector<4x256xf32>
    %33 = vector.shape_cast %30 : vector<4x256xf32> to vector<1x4x256xf32>
    tpu.vector_store %arg5[%c1_37, %c0_38, %c0_39], %33 {strides = array<i32>} : memref<3x4x256xf32, #tpu.memory_space<vmem>>, vector<1x4x256xf32>,
    %c2 = arith.constant 2 : index
    %c0_40 = arith.constant 0 : index
    %c0_41 = arith.constant 0 : index
    %34 = vector.load %arg1[%c2, %c0_40, %c0_41] : memref<3x4x128xf32, #tpu.memory_space<vmem>>, vector<1x4x128xf32>
    %35 = vector.shape_cast %34 : vector<1x4x128xf32> to vector<4x128xf32>
    %c2_42 = arith.constant 2 : index
    %c0_43 = arith.constant 0 : index
    %c0_44 = arith.constant 0 : index
    %36 = vector.load %arg2[%c2_42, %c0_43, %c0_44] : memref<3x128x256xf32, #tpu.memory_space<vmem>>, vector<1x128x256xf32>
    %37 = vector.shape_cast %36 : vector<1x128x256xf32> to vector<128x256xf32>
    %cst_45 = arith.constant dense<0.000000e+00> : vector<4x256xf32>
    %38 = tpu.matmul %35, %37, %cst_45 {dimension_numbers = #tpu.dot_dimension_numbers<[1], [0], [0], [1], [0, 0, 1, 1], [], []>} : vector<4x128xf32>, vector<128x256xf32>, vector<4x256xf32> -> vector<4x256xf32>
    %c2_46 = arith.constant 2 : index
    %c0_47 = arith.constant 0 : index
    %c0_48 = arith.constant 0 : index
    %39 = vector.load %arg3[%c2_46, %c0_47, %c0_48] : memref<3x1x256xf32, #tpu.memory_space<vmem>>, vector<1x1x256xf32>
    %40 = vector.shape_cast %39 : vector<1x1x256xf32> to vector<1x256xf32>
    %41 = vector.broadcast %40 : vector<1x256xf32> to vector<4x256xf32>
    %42 = arith.addf %38, %41 : vector<4x256xf32>
    %c2_49 = arith.constant 2 : index
    %c0_50 = arith.constant 0 : index
    %c0_51 = arith.constant 0 : index
    %43 = vector.load %arg5[%c2_49, %c0_50, %c0_51] : memref<3x4x256xf32, #tpu.memory_space<vmem>>, vector<1x4x256xf32>
    %44 = vector.shape_cast %43 : vector<1x4x256xf32> to vector<4x256xf32>
    %45 = vector.shape_cast %42 : vector<4x256xf32> to vector<1x4x256xf32>
    tpu.vector_store %arg5[%c2_49, %c0_50, %c0_51], %45 {strides = array<i32>} : memref<3x4x256xf32, #tpu.memory_space<vmem>>, vector<1x4x256xf32>,
    return
  }
}

</mosaic_0001>

<bundles_post_ra>
// kernel: tpu_custom_call.1
= control target key start
LH: loop header
LB: loop body
LE: loop exit
PB: predicated region body
PF: predicated region fallthrough
CT: control target
= control target key end

     0   :  { %11 = vsyncpa [#allocation3], 0  ;;  %s659_s0 = inlined_call_operand.vmem [shape: f32[4,12,128], index: 0, kind: input, shape index: {}]   ;;  %s660_s1 = inlined_call_operand.vmem [shape: f32[3,4,128], index: 1, kind: input, shape index: {}]   ;;  %s661_s2 = inlined_call_operand.hbm [shape: f32[3,128,256], index: 2, kind: input, shape index: {}]   ;;  %s662_s3 = inlined_call_operand.vmem [shape: f32[3,1,256], index: 3, kind: input, shape index: {}]   ;;  %s663_s4 = inlined_call_operand.hbm [shape: f32[4,16,128], index: 4, kind: output, shape index: {0}]   ;;  %s664_s5 = inlined_call_operand.hbm [shape: f32[3,4,256], index: 5, kind: output, shape index: {1}]  }
   0x1   :  { %12 = vsyncpa [#allocation4], 0 }
   0x2   :  { %13 = vsyncpa [#allocation7], 0  ;;  %s546_s18 = smov [#allocation2]  }
   0x3   :  { %s23_s19 = sshll.u32 %s546_s18, 4  ;;  %s24_s19 = int_to_ptr.vmem [resolvable:$true] %s23_s19 }
   0x4   :  { %s488_s20 = scalar_lea.vmem %s24_s19, 12288  ;;  %p493_p1 = scmp.lt.s32.totalorder %s24_s19, %s24_s19 }
   0x5   :  { %p489_p0 = scmp.ne.s32.totalorder %s24_s19, %s488_s20  ;;  %p494_p2 = scmp.lt.s32.totalorder %s488_s20, %s488_s20 }
   0x7   :  { %p495_p3 = por %p494_p2, %p493_p1 }
   0x9   :  { %p496_p4 = pnand %p495_p3, %p489_p0 }
   0xb   :  { %499 = shalt.err (!%p496_p4)
}
   0xc   :  { %s547_s21 = smov 256   ;;  %s548_s22 = smov 16  }
   0xd   :  { %29 = dma.hbm_to_vmem [thread:$0]  %s661_s2, 12288, %s24_s19, [#allocation3], %s547_s21, %s547_s21, %s548_s22  }
   0xe   :  { %540 = dma.done.wait [#allocation3], 12288  }
   0xf   :  { %541 = vsyncadd [#allocation3], 4294955008  ;;  %v549_v0 = vmov 0.0   ;;  %v96_v1 = vld [vmem:[#allocation2 + $0xf8] sm:$0xff]  ;;  %v95_v2 = vld [vmem:[#allocation2 + $0xf0] sm:$0xff]  ;;  %s550_s17 = smov [#allocation5]  }
  0x10   :  { %173 = vmatprep.mubr.f32.mxu0 %v549_v0  ;;  %297 = vmatprep.mubr.f32.mxu1 %v549_v0  ;;  %v94_v3 = vld [vmem:[#allocation2 + $0xe8] sm:$0xff]  ;;  %v93_v4 = vld [vmem:[#allocation2 + $0xe0] sm:$0xff]  ;;  %v92_v5 = vld [vmem:[#allocation2 + $0xd8] sm:$0xff]  ;;  %s440_s18 = sshll.u32 %s550_s17, 4  ;;  %s441_s18 = int_to_ptr.vmem [resolvable:$true] %s440_s18 }
  0x11   :  { %109 = vmatprep.subr.mxu0 %v96_v1  ;;  %v91_v6 = vld [vmem:[#allocation2 + $0xd0] sm:$0xff]  ;;  %v90_v7 = vld [vmem:[#allocation2 + $0xc8] sm:$0xff]  ;;  %v89_v8 = vld [vmem:[#allocation2 + $0xc0] sm:$0xff]  ;;  %s500_s6 = scalar_lea.vmem %s441_s18, 1024  ;;  %p505_p6 = scmp.lt.s32.totalorder %s441_s18, %s441_s18 }
  0x12   :  { %110 = vmatpush1.msra.mxu0 %v95_v2  ;;  %v88_v9 = vld [vmem:[#allocation2 + $0xb8] sm:$0xff]  ;;  %v87_v10 = vld [vmem:[#allocation2 + $0xb0] sm:$0xff]  ;;  %v86_v11 = vld [vmem:[#allocation2 + $0xa8] sm:$0xff]  ;;  %p501_p5 = scmp.ne.s32.totalorder %s441_s18, %s500_s6  ;;  %p506_p7 = scmp.lt.s32.totalorder %s500_s6, %s500_s6 }
  0x13   :  { %111 = vmatprep.subr.mxu0 %v94_v3  ;;  %v85_v12 = vld [vmem:[#allocation2 + $0xa0] sm:$0xff]  ;;  %v84_v13 = vld [vmem:[#allocation2 + $0x98] sm:$0xff]  ;;  %v83_v15 = vld [vmem:[#allocation2 + $0x90] sm:$0xff] }
  0x14   :  { %112 = vmatpush1.msra.mxu0 %v93_v4  ;;  %v219_v14 = vld [vmem:[#allocation2 + $0x1f8] sm:$0xff]  ;;  %v218_v16 = vld [vmem:[#allocation2 + $0x1f0] sm:$0xff]  ;;  %v217_v17 = vld [vmem:[#allocation2 + $0x1e8] sm:$0xff]  ;;  %p507_p8 = por %p506_p7, %p505_p6 }
  0x15   :  { %113 = vmatprep.subr.mxu0 %v92_v5  ;;  %233 = vmatprep.subr.mxu1 %v219_v14  ;;  %v82_v18 = vld [vmem:[#allocation2 + $0x88] sm:$0xff]  ;;  %v216_v19 = vld [vmem:[#allocation2 + $0x1e0] sm:$0xff]  ;;  %v215_v21 = vld [vmem:[#allocation2 + $0x1d8] sm:$0xff] }
  0x16   :  { %114 = vmatpush1.msra.mxu0 %v91_v6  ;;  %234 = vmatpush1.msra.mxu1 %v218_v16  ;;  %v81_v20 = vld [vmem:[#allocation2 + $0x80] sm:$0xff]  ;;  %v214_v22 = vld [vmem:[#allocation2 + $0x1d0] sm:$0xff]  ;;  %v80_v23 = vld [vmem:[#allocation2 + $0x78] sm:$0xff]  ;;  %p508_p9 = pnand %p507_p8, %p501_p5 }
  0x17   :  { %115 = vmatprep.subr.mxu0 %v90_v7  ;;  %235 = vmatprep.subr.mxu1 %v217_v17  ;;  %v213_v24 = vld [vmem:[#allocation2 + $0x1c8] sm:$0xff]  ;;  %v79_v25 = vld [vmem:[#allocation2 + $0x70] sm:$0xff]  ;;  %v212_v26 = vld [vmem:[#allocation2 + $0x1c0] sm:$0xff] }
  0x18   :  { %116 = vmatpush1.msra.mxu0 %v89_v8  ;;  %236 = vmatpush1.msra.mxu1 %v216_v19  ;;  %v78_v27 = vld [vmem:[#allocation2 + $0x68] sm:$0xff]  ;;  %v211_v28 = vld [vmem:[#allocation2 + $0x1b8] sm:$0xff]  ;;  %v77_v29 = vld [vmem:[#allocation2 + $0x60] sm:$0xff] }
  0x19   :  { %117 = vmatprep.subr.mxu0 %v88_v9  ;;  %237 = vmatprep.subr.mxu1 %v215_v21  ;;  %v210_v30 = vld [vmem:[#allocation2 + $0x1b0] sm:$0xff]  ;;  %v76_v31 = vld [vmem:[#allocation2 + $0x58] sm:$0xff]  ;;  %v209_v32 = vld [vmem:[#allocation2 + $0x1a8] sm:$0xff] }
  0x1a   :  { %118 = vmatpush1.msra.mxu0 %v87_v10  ;;  %238 = vmatpush1.msra.mxu1 %v214_v22  ;;  %v75_v33 = vld [vmem:[#allocation2 + $0x50] sm:$0xff]  ;;  %v208_v34 = vld [vmem:[#allocation2 + $0x1a0] sm:$0xff]  ;;  %v74_v35 = vld [vmem:[#allocation2 + $0x48] sm:$0xff] }
  0x1b   :  { %119 = vmatprep.subr.mxu0 %v86_v11  ;;  %239 = vmatprep.subr.mxu1 %v213_v24  ;;  %v207_v36 = vld [vmem:[#allocation2 + $0x198] sm:$0xff]  ;;  %v73_v37 = vld [vmem:[#allocation2 + $0x40] sm:$0xff]  ;;  %v206_v38 = vld [vmem:[#allocation2 + $0x190] sm:$0xff] }
  0x1c   :  { %120 = vmatpush1.msra.mxu0 %v85_v12  ;;  %240 = vmatpush1.msra.mxu1 %v212_v26  ;;  %v72_v39 = vld [vmem:[#allocation2 + $0x38] sm:$0xff]  ;;  %v205_v40 = vld [vmem:[#allocation2 + $0x188] sm:$0xff]  ;;  %v71_v41 = vld [vmem:[#allocation2 + $0x30] sm:$0xff] }
  0x1d   :  { %121 = vmatprep.subr.mxu0 %v84_v13  ;;  %241 = vmatprep.subr.mxu1 %v211_v28  ;;  %v204_v42 = vld [vmem:[#allocation2 + $0x180] sm:$0xff]  ;;  %v70_v43 = vld [vmem:[#allocation2 + $0x28] sm:$0xff]  ;;  %v203_v44 = vld [vmem:[#allocation2 + $0x178] sm:$0xff] }
  0x1e   :  { %122 = vmatpush1.msra.mxu0 %v83_v15  ;;  %242 = vmatpush1.msra.mxu1 %v210_v30  ;;  %v69_v45 = vld [vmem:[#allocation2 + $0x20] sm:$0xff]  ;;  %v202_v46 = vld [vmem:[#allocation2 + $0x170] sm:$0xff]  ;;  %v68_v47 = vld [vmem:[#allocation2 + $0x18] sm:$0xff] }
  0x1f   :  { %123 = vmatprep.subr.mxu0 %v82_v18  ;;  %243 = vmatprep.subr.mxu1 %v209_v32  ;;  %v201_v48 = vld [vmem:[#allocation2 + $0x168] sm:$0xff]  ;;  %v67_v49 = vld [vmem:[#allocation2 + $0x10] sm:$0xff]  ;;  %v200_v50 = vld [vmem:[#allocation2 + $0x160] sm:$0xff] }
  0x20   :  { %124 = vmatpush1.msra.mxu0 %v81_v20  ;;  %244 = vmatpush1.msra.mxu1 %v208_v34  ;;  %v66_v51 = vld [vmem:[#allocation2 + $0x8] sm:$0xff]  ;;  %v199_v52 = vld [vmem:[#allocation2 + $0x158] sm:$0xff]  ;;  %v65_v53 = vld [vmem:[#allocation2] sm:$0xff] }
  0x21   :  { %125 = vmatprep.subr.mxu0 %v80_v23  ;;  %245 = vmatprep.subr.mxu1 %v207_v36  ;;  %v198_v54 = vld [vmem:[#allocation2 + $0x150] sm:$0xff]  ;;  %v64_v55 = vld [vmem:[%s660_s1] sm:$0xf]  ;;  %v344_v56 = vld [vmem:[#allocation2 + $0x2f8] sm:$0xff] }
  0x22   :  { %126 = vmatpush1.msra.mxu0 %v79_v25  ;;  %246 = vmatpush1.msra.mxu1 %v206_v38  ;;  %v343_v57 = vld [vmem:[#allocation2 + $0x2f0] sm:$0xff]  ;;  %v197_v58 = vld [vmem:[#allocation2 + $0x148] sm:$0xff]  ;;  %v196_v60 = vld [vmem:[#allocation2 + $0x140] sm:$0xff] }
  0x23   :  { %127 = vmatprep.subr.mxu0 %v78_v27  ;;  %247 = vmatprep.subr.mxu1 %v205_v40  ;;  %v342_v59 = vld [vmem:[#allocation2 + $0x2e8] sm:$0xff]  ;;  %v341_v61 = vld [vmem:[#allocation2 + $0x2e0] sm:$0xff]  ;;  %v195_v62 = vld [vmem:[#allocation2 + $0x138] sm:$0xff] }
  0x24   :  { %128 = vmatpush1.msra.mxu0 %v77_v29  ;;  %248 = vmatpush1.msra.mxu1 %v204_v42  ;;  %v340_v63 = vld [vmem:[#allocation2 + $0x2d8] sm:$0xff]  ;;  %v194_v1 = vld [vmem:[#allocation2 + $0x130] sm:$0xff]  ;;  %v193_v3 = vld [vmem:[#allocation2 + $0x128] sm:$0xff] }
  0x25   :  { %129 = vmatprep.subr.mxu0 %v76_v31  ;;  %249 = vmatprep.subr.mxu1 %v203_v44  ;;  %v339_v2 = vld [vmem:[#allocation2 + $0x2d0] sm:$0xff]  ;;  %v338_v4 = vld [vmem:[#allocation2 + $0x2c8] sm:$0xff]  ;;  %v192_v5 = vld [vmem:[#allocation2 + $0x120] sm:$0xff] }
  0x26   :  { %130 = vmatpush1.msra.mxu0 %v75_v33  ;;  %250 = vmatpush1.msra.mxu1 %v202_v46  ;;  %v337_v6 = vld [vmem:[#allocation2 + $0x2c0] sm:$0xff]  ;;  %v191_v7 = vld [vmem:[#allocation2 + $0x118] sm:$0xff]  ;;  %v190_v9 = vld [vmem:[#allocation2 + $0x110] sm:$0xff] }
  0x27   :  { %131 = vmatprep.subr.mxu0 %v74_v35  ;;  %251 = vmatprep.subr.mxu1 %v201_v48  ;;  %v336_v8 = vld [vmem:[#allocation2 + $0x2b8] sm:$0xff]  ;;  %v335_v10 = vld [vmem:[#allocation2 + $0x2b0] sm:$0xff]  ;;  %v189_v11 = vld [vmem:[#allocation2 + $0x108] sm:$0xff] }
  0x28   :  { %132 = vmatpush1.msra.mxu0 %v73_v37  ;;  %252 = vmatpush1.msra.mxu1 %v200_v50  ;;  %v334_v12 = vld [vmem:[#allocation2 + $0x2a8] sm:$0xff]  ;;  %v188_v13 = vld [vmem:[#allocation2 + $0x100] sm:$0xff]  ;;  %v332_v16 = vld [vmem:[#allocation2 + $0x298] sm:$0xff] }
  0x29   :  { %133 = vmatprep.subr.mxu0 %v72_v39  ;;  %253 = vmatprep.subr.mxu1 %v199_v52  ;;  %v333_v14 = vld [vmem:[#allocation2 + $0x2a0] sm:$0xff]  ;;  %v331_v17 = vld [vmem:[#allocation2 + $0x290] sm:$0xff]  ;;  %v330_v18 = vld [vmem:[#allocation2 + $0x288] sm:$0xff] }
  0x2a   :  { %134 = vmatpush1.msra.mxu0 %v71_v41  ;;  %254 = vmatpush1.msra.mxu1 %v198_v54  ;;  %v468_v15 = vld [vmem:[%s660_s1 + $0x4] sm:$0xf]  ;;  %v328_v20 = vld [vmem:[#allocation2 + $0x278] sm:$0xff]  ;;  %v327_v21 = vld [vmem:[#allocation2 + $0x270] sm:$0xff] }
  0x2b   :  { %135 = vmatprep.subr.mxu0 %v70_v43  ;;  %255 = vmatprep.subr.mxu1 %v197_v58  ;;  %v329_v19 = vld [vmem:[#allocation2 + $0x280] sm:$0xff]  ;;  %v326_v22 = vld [vmem:[#allocation2 + $0x268] sm:$0xff]  ;;  %v324_v24 = vld [vmem:[#allocation2 + $0x258] sm:$0xff] }
  0x2c   :  { %136 = vmatpush1.msra.mxu0 %v69_v45  ;;  %256 = vmatpush1.msra.mxu1 %v196_v60  ;;  %v325_v23 = vld [vmem:[#allocation2 + $0x260] sm:$0xff]  ;;  %v323_v25 = vld [vmem:[#allocation2 + $0x250] sm:$0xff]  ;;  %v322_v26 = vld [vmem:[#allocation2 + $0x248] sm:$0xff] }
  0x2d   :  { %137 = vmatprep.subr.mxu0 %v68_v47  ;;  %257 = vmatprep.subr.mxu1 %v195_v62  ;;  %v321_v27 = vld [vmem:[#allocation2 + $0x240] sm:$0xff]  ;;  %v320_v28 = vld [vmem:[#allocation2 + $0x238] sm:$0xff]  ;;  %v318_v29 = vld [vmem:[#allocation2 + $0x228] sm:$0xff] }
  0x2e   :  { %138 = vmatpush1.msra.mxu0 %v67_v49  ;;  %258 = vmatpush1.msra.mxu1 %v194_v1  ;;  %v317_v30 = vld [vmem:[#allocation2 + $0x220] sm:$0xff]  ;;  %v316_v31 = vld [vmem:[#allocation2 + $0x218] sm:$0xff]  ;;  %v315_v32 = vld [vmem:[#allocation2 + $0x210] sm:$0xff] }
  0x2f   :  { %139 = vmatprep.subr.mxu0 %v66_v51  ;;  %259 = vmatprep.subr.mxu1 %v193_v3  ;;  %v314_v33 = vld [vmem:[#allocation2 + $0x208] sm:$0xff]  ;;  %v313_v34 = vld [vmem:[#allocation2 + $0x200] sm:$0xff]  ;;  %v36_v37 = vld [vmem:[%s659_s0 + $0x10] sm:$0x1] }
  0x30   :  { %140 = vmatpush1.msra.mxu0 %v65_v53  ;;  %260 = vmatpush1.msra.mxu1 %v192_v5  ;;  %v470_v35 = vld [vmem:[%s660_s1 + $0x8] sm:$0xf]  ;;  %v35_v36 = vld [vmem:[%s659_s0] sm:$0x1]  ;;  %v38_v39 = vld [vmem:[%s659_s0 + $0x30] sm:$0x1] }
  0x31   :  { %174 = vmatmul.mubr.f32.vlgmr.msra.gmra.mxu0 %v64_v55  ;;  %358 = vmatprep.subr.mxu0 %v344_v56  ;;  %v37_v38 = vld [vmem:[%s659_s0 + $0x20] sm:$0x1]  ;;  %39 = vst [vmem:[#allocation5] sm:$0x1] %v35_v36  ;;  %40 = vst [vmem:[#allocation5 + $0x10] sm:$0x1] %v36_v37 }
  0x32   :  { %359 = vmatpush1.msra.mxu0 %v343_v57  ;;  %261 = vmatprep.subr.mxu1 %v191_v7  ;;  %41 = vst [vmem:[#allocation5 + $0x20] sm:$0x1] %v37_v38  ;;  %v43_v40 = vld [vmem:[%s660_s1] sm:$0xf]  ;;  %42 = vst [vmem:[#allocation5 + $0x30] sm:$0x1] %v38_v39 }
  0x33   :  { %360 = vmatprep.subr.mxu0 %v342_v59  ;;  %262 = vmatpush1.msra.mxu1 %v190_v9  ;;  %v48_v41 = vld [vmem:[%s659_s0 + $0x1] sm:$0xff]  ;;  %44 = vst [vmem:[#allocation5 + $0x1] sm:$0xf] %v43_v40  ;;  %45 = vst [vmem:[#allocation5 + $0x11] sm:$0xf] %v43_v40  ;;  %v50_v43 = vld [vmem:[%s659_s0 + $0x11] sm:$0xff] }
  0x34   :  { %361 = vmatpush1.msra.mxu0 %v341_v61  ;;  %263 = vmatprep.subr.mxu1 %v189_v11  ;;  %46 = vst [vmem:[#allocation5 + $0x21] sm:$0xf] %v43_v40  ;;  %47 = vst [vmem:[#allocation5 + $0x31] sm:$0xf] %v43_v40  ;;  %v49_v42 = vld [vmem:[%s659_s0 + $0x9] sm:$0x7] }
  0x35   :  { %362 = vmatprep.subr.mxu0 %v340_v63  ;;  %264 = vmatpush1.msra.mxu1 %v188_v13  ;;  %v51_v44 = vld [vmem:[%s659_s0 + $0x19] sm:$0x7]  ;;  %56 = vst [vmem:[#allocation5 + $0x5] sm:$0xff] %v48_v41  ;;  %v52_v45 = vld [vmem:[%s659_s0 + $0x21] sm:$0xff]  ;;  %v53_v46 = vld [vmem:[%s659_s0 + $0x29] sm:$0x7] }
  0x36   :  { %363 = vmatpush1.msra.mxu0 %v339_v2  ;;  %298 = vmatmul.mubr.f32.vlgmr.msra.gmra.mxu1 %v468_v15  ;;  %v54_v47 = vld [vmem:[%s659_s0 + $0x31] sm:$0xff]  ;;  %57 = vst [vmem:[#allocation5 + $0xd] sm:$0x7] %v49_v42  ;;  %58 = vst [vmem:[#allocation5 + $0x15] sm:$0xff] %v50_v43  ;;  %v55_v48 = vld [vmem:[%s659_s0 + $0x39] sm:$0x7] }
  0x37   :  { %364 = vmatprep.subr.mxu0 %v338_v4  ;;  %422 = vmatprep.mubr.f32.mxu0 %v549_v0  ;;  %v319_v0 = vld [vmem:[#allocation2 + $0x230] sm:$0xff]  ;;  %59 = vst [vmem:[#allocation5 + $0x1d] sm:$0x7] %v51_v44  ;;  %60 = vst [vmem:[#allocation5 + $0x25] sm:$0xff] %v52_v45 }
  0x38   :  { %365 = vmatpush1.msra.mxu0 %v337_v6  ;;  %61 = vst [vmem:[#allocation5 + $0x2d] sm:$0x7] %v53_v46  ;;  %62 = vst [vmem:[#allocation5 + $0x35] sm:$0xff] %v54_v47 }
  0x39   :  { %366 = vmatprep.subr.mxu0 %v336_v8  ;;  %63 = vst [vmem:[#allocation5 + $0x3d] sm:$0x7] %v55_v48 }
  0x3a   :  { %367 = vmatpush1.msra.mxu0 %v335_v10 }
  0x3b   :  { %368 = vmatprep.subr.mxu0 %v334_v12 }
  0x3c   :  { %369 = vmatpush1.msra.mxu0 %v333_v14 }
  0x3d   :  { %370 = vmatprep.subr.mxu0 %v332_v16 }
  0x3e   :  { %371 = vmatpush1.msra.mxu0 %v331_v17 }
  0x3f   :  { %372 = vmatprep.subr.mxu0 %v330_v18 }
  0x40   :  { %373 = vmatpush1.msra.mxu0 %v329_v19 }
  0x41   :  { %374 = vmatprep.subr.mxu0 %v328_v20 }
  0x42   :  { %375 = vmatpush1.msra.mxu0 %v327_v21 }
  0x43   :  { %376 = vmatprep.subr.mxu0 %v326_v22 }
  0x44   :  { %377 = vmatpush1.msra.mxu0 %v325_v23 }
  0x45   :  { %378 = vmatprep.subr.mxu0 %v324_v24 }
  0x46   :  { %379 = vmatpush1.msra.mxu0 %v323_v25 }
  0x47   :  { %380 = vmatprep.subr.mxu0 %v322_v26 }
  0x48   :  { %381 = vmatpush1.msra.mxu0 %v321_v27 }
  0x49   :  { %382 = vmatprep.subr.mxu0 %v320_v28 }
  0x4a   :  { %383 = vmatpush1.msra.mxu0 %v319_v0 }
  0x4b   :  { %384 = vmatprep.subr.mxu0 %v318_v29 }
  0x4c   :  { %385 = vmatpush1.msra.mxu0 %v317_v30 }
  0x4d   :  { %386 = vmatprep.subr.mxu0 %v316_v31 }
  0x4e   :  { %387 = vmatpush1.msra.mxu0 %v315_v32 }
  0x4f   :  { %388 = vmatprep.subr.mxu0 %v314_v33 }
  0x50   :  { %389 = vmatpush1.msra.mxu0 %v313_v34 }
  0x51   :  { %423 = vmatmul.mubr.f32.vlgmr.msra.gmra.mxu0 %v470_v35 }
  0x52   :  { %511 = shalt.err (!%p508_p9)
}
  0x53   :  { %s551_s7 = smov 128   ;;  %s552_s8 = smov 8   ;;  %v99_v49 = vlaneseq  ;;  %v97_v52 = vld [vmem:[%s662_s3] sm:$0x3]  ;;  %v469_v61 = vld [vmem:[%s662_s3 + $0x2] sm:$0x3] }
  0x54   :  { %446 = dma.vmem_to_hbm [thread:$0]  %s441_s18, 1024, %s663_s4, [#allocation4], %s551_s7, %s551_s7, %s552_s8  }
  0x55   :  { %v100_v50 = vshrl.u32 %v99_v49, 7  ;;  %v471_v6 = vld [vmem:[%s662_s3 + $0x4] sm:$0x3]  ;;  %s553_s15 = smov [#allocation6]  }
  0x56   :  { %s452_s16 = sshll.u32 %s553_s15, 4  ;;  %s453_s16 = int_to_ptr.vmem [resolvable:$true] %s452_s16 }
  0x57   :  { %v101_v51 = vsub.s32 0, %v100_v50  ;;  %v105_v53 = vsub.s32 1, %v100_v50  ;;  %s520_s17 = scalar_lea.vmem %s453_s16, 384  ;;  %p525_p11 = scmp.lt.s32.totalorder %s453_s16, %s453_s16 }
  0x58   :  { %p521_p10 = scmp.ne.s32.totalorder %s453_s16, %s520_s17  ;;  %p526_p12 = scmp.lt.s32.totalorder %s520_s17, %s520_s17 }
  0x59   :  { %v102_v54 = vrot.slane %v97_v52, %v101_v51  ;;  %v106_v55 = vrot.slane %v97_v52, %v105_v53  ;;  %v226_v62 = vrot.slane %v469_v61, %v101_v51  ;;  %v230_v63 = vrot.slane %v469_v61, %v105_v53 }
  0x5a   :  { %v351_v7 = vrot.slane %v471_v6, %v101_v51  ;;  %v355_v8 = vrot.slane %v471_v6, %v105_v53  ;;  %p527_p13 = por %p526_p12, %p525_p11 }
  0x5c   :  { %p528_p0 = pnand %p527_p13, %p521_p10 }
  0xf1   :  { %v175_v56 = vpop.f32.mrf.mxu0 }
  0xf2   :  { %v176_v57 = vadd.f32 %v175_v56, %v102_v54 }
  0xf3   :  { %v177_v58 = vpop.f32.mrf.mxu0 }
  0xf4   :  { %v178_v59 = vadd.f32 %v177_v58, %v106_v55 }
  0xf6   :  { %v182_v60 = vcombine.low %v176_v57, %v178_v59  ;;  %v299_v1 = vpop.f32.mrf.mxu1 }
  0xf7   :  { %v300_v2 = vadd.f32 %v299_v1, %v226_v62 }
  0xf8   :  { %184 = vst [vmem:[#allocation6] sm:$0xff] %v182_v60  ;;  %v301_v3 = vpop.f32.mrf.mxu1 }
  0xf9   :  { %v302_v4 = vadd.f32 %v301_v3, %v230_v63 }
  0xfb   :  { %v306_v5 = vcombine.low %v300_v2, %v302_v4 }
  0xfd   :  { %309 = vst [vmem:[#allocation6 + $0x8] sm:$0xff] %v306_v5 }
 0x111   :  { %v424_v9 = vpop.f32.mrf.mxu0 }
 0x112   :  { %v425_v11 = vadd.f32 %v424_v9, %v351_v7 }
 0x113   :  { %v426_v10 = vpop.f32.mrf.mxu0 }
 0x114   :  { %v427_v12 = vadd.f32 %v426_v10, %v355_v8 }
 0x116   :  { %v431_v13 = vcombine.low %v425_v11, %v427_v12 }
 0x118   :  { %434 = vst [vmem:[#allocation6 + $0x10] sm:$0xff] %v431_v13 }
 0x119   :  { %531 = shalt.err (!%p528_p0)
}
 0x11a   :  { %458 = dma.vmem_to_hbm [thread:$0]  %s453_s16, 384, %s664_s5, [#allocation7], %s551_s7, %s551_s7, %s552_s8  }
 0x11b   :  { %542 = dma.done.wait [#allocation4], 1024  }
 0x11c   :  { %543 = vsyncadd [#allocation4], 4294966272 }
 0x11d   :  { %544 = dma.done.wait [#allocation7], 384  }
 0x11e   :  { %545 = vsyncadd [#allocation7], 4294966912 }
 0x11f   :  { %465 = vsyncpa [#allocation3], 1 }
 0x120   :  { %466 = vsyncpa [#allocation4], 1 }
 0x121   :  { %467 = vsyncpa [#allocation7], 1 }

</bundles_post_ra>
